<compile_context>
chip_gen: v5e
topology: v5e:2x2
jax: 0.10.0
libtpu: 0.0.40
codegen_flags: <defaults>
</compile_context>

<pallas_src>
import jax
import jax.numpy as jnp
from jax.experimental import pallas as pl
from jax.experimental.pallas import tpu as pltpu


def _normalize_kernel(x_ref, o_ref):
    # x_ref block: (N, TF) -- full batch, one lane-dense tile of features.
    n = x_ref.shape[0]
    xf = x_ref[...].astype(jnp.float32)            # no-op for f32 inputs
    mean = jnp.mean(xf, axis=0, keepdims=True)     # (1, TF), sublane (XLU) reduce
    xc = xf - mean                                 # xf dead after this line
    # PyTorch Tensor.std default is unbiased (ddof = 1); n >= 2 guaranteed by wrapper.
    var = jnp.sum(xc * xc, axis=0, keepdims=True) * (1.0 / (n - 1))
    std = jnp.sqrt(var)
    # Per-column exact reciprocal instead of an (N, TF) full-tile divide:
    # EUP work on a (1, TF) row only; exact (not approx) to match reference.
    inv = pl.reciprocal(std + 1e-6)                # (1, TF)
    o_ref[...] = (xc * inv).astype(o_ref.dtype)


def _round_up_128(v):
    return -(-v // 128) * 128


def normalize(x, *, tile_f=2048):
    """x: (N, C, H, W) -> (N, C, H, W), normalized over dim 0 (unbiased std + 1e-6)."""
    if x.ndim != 4:
        raise ValueError(f"expected NCHW input, got shape {x.shape}")
    N, C, H, W = x.shape
    if N < 2:
        # PyTorch's unbiased std is NaN for a single sample; fail loudly instead.
        raise ValueError("Normalize requires batch size >= 2 (unbiased std over dim 0).")
    F = C * H * W
    x2 = x.reshape(N, F)

    itemsize = jnp.dtype(x.dtype).itemsize
    # Sublane padding of the batch dim inside VMEM/vregs (f32: 8, bf16: 16, int8/fp8: 32).
    sublane = 8 if itemsize >= 4 else (16 if itemsize == 2 else 32)
    n_pad = -(-N // sublane) * sublane

    # ---- Generation-aware VMEM budget -------------------------------------
    # v5e/v6e: 128 MiB physical per TC; v7x: 64 MiB per TC.  Budget the blocks
    # against ~60% of capacity (cap 72 MiB) and raise the scoped limit
    # explicitly, leaving headroom for compiler-internal scratch.
    try:
        vmem_cap = int(pltpu.get_tpu_info().vmem_capacity_bytes)
    except Exception:
        vmem_cap = 64 * 1024 * 1024  # conservative (v7x per-TC) fallback
    vmem_budget = min(int(0.6 * vmem_cap), 72 * 1024 * 1024)
    vmem_limit = int(max(32 * 1024 * 1024,
                         min(vmem_cap - 8 * 1024 * 1024,
                             vmem_budget + 16 * 1024 * 1024)))

    # Per feature-column VMEM footprint:
    #   2 buffers x (in + out) blocks (4 * itemsize)  +  ~2 f32 in-kernel temps (8 B).
    bytes_per_col = n_pad * (4 * itemsize + 8)

    # Lane-dense feature tile: multiple of 128, capped at the feature count.
    tf = max(128, min(tile_f, _round_up_128(F)))
    if F > 128:
        # Keep at least 2 tiles so the "parallel" axis can use both v7x TCs.
        tf = min(tf, _round_up_128(pl.cdiv(F, 2)))
    while tf > 128 and tf * bytes_per_col > vmem_budget:
        tf -= 128

    # Ragged final tile is handled by Pallas (masked store); no pad/slice passes.
    grid_f = pl.cdiv(F, tf)

    out2 = pl.pallas_call(
        _normalize_kernel,
        out_shape=jax.ShapeDtypeStruct((N, F), x.dtype),
        grid_spec=pltpu.PrefetchScalarGridSpec(
            num_scalar_prefetch=0,
            grid=(grid_f,),
            in_specs=[pl.BlockSpec((N, tf), lambda j: (0, j))],
            out_specs=pl.BlockSpec((N, tf), lambda j: (0, j)),
        ),
        compiler_params=pltpu.CompilerParams(
            # Feature tiles are independent: shard across TensorCores on v7x;
            # near-neutral (but harmless) on single-TC v5e/v6e.
            dimension_semantics=("parallel",),
            vmem_limit_bytes=vmem_limit,
        ),
        cost_estimate=pl.CostEstimate(
            flops=6 * N * F,
            transcendentals=2 * F,
            bytes_accessed=2 * N * F * itemsize,
        ),
    )(x2)

    return out2.reshape(N, C, H, W)


def _reference(x):
    mean = jnp.mean(x, axis=0, keepdims=True)
    std = jnp.std(x, axis=0, keepdims=True, ddof=1)
    return (x - mean) / (std + 1e-6)


if __name__ == "__main__":
    key = jax.random.PRNGKey(0)

    # Test 1: F divisible by the tile size.
    k1, k2 = jax.random.split(key)
    x1 = jax.random.normal(k1, (2, 4, 16, 16), dtype=jnp.float32) * 2.0 + 0.5
    out1 = jax.block_until_ready(normalize(x1))
    ref1 = _reference(x1)
    assert out1.shape == x1.shape and out1.dtype == x1.dtype
    assert jnp.allclose(out1, ref1, atol=1e-4, rtol=1e-4)

    # Test 2: F not divisible by 128 / by the tile size (ragged final tile path).
    x2 = jax.random.normal(k2, (4, 3, 10, 10), dtype=jnp.float32) * 0.7 - 0.2
    out2 = jax.block_until_ready(normalize(x2))
    ref2 = _reference(x2)
    assert out2.shape == x2.shape and out2.dtype == x2.dtype
    assert jnp.allclose(out2, ref2, atol=1e-4, rtol=1e-4)

    print("KERNEL_OK")
</pallas_src>

<mosaic_0001>
module attributes {stable_mosaic.version = 11 : i64} {
  func.func @_normalize_kernel(%arg0: i32, %arg1: memref<2x512xf32, #tpu.memory_space<vmem>>, %arg2: memref<2x512xf32, #tpu.memory_space<vmem>>) attributes {dimension_semantics = [#tpu.dimension_semantics<parallel>], iteration_bounds = array<i64: 2>, scalar_prefetch = 0 : i64, scratch_operands = 0 : i64, tpu.core_type = #tpu.core_type<tc>, window_params = [{transform_indices = @transform_0, window_bounds = array<i64: 2, 512>}, {transform_indices = @transform_1, window_bounds = array<i64: 2, 512>}]} {
    %c0 = arith.constant 0 : index
    %c0_0 = arith.constant 0 : index
    %0 = vector.load %arg1[%c0, %c0_0] : memref<2x512xf32, #tpu.memory_space<vmem>>, vector<2x512xf32>
    %cst = arith.constant dense<0.000000e+00> : vector<512xf32>
    %1 = vector.multi_reduction <add>, %0, %cst [0] : vector<2x512xf32> to vector<512xf32>
    %2 = vector.shape_cast %1 : vector<512xf32> to vector<1x512xf32>
    %cst_1 = arith.constant 2.000000e+00 : f32
    %3 = vector.broadcast %cst_1 : f32 to vector<1x512xf32>
    %4 = arith.divf %2, %3 : vector<1x512xf32>
    %5 = vector.broadcast %4 : vector<1x512xf32> to vector<2x512xf32>
    %6 = arith.subf %0, %5 : vector<2x512xf32>
    %7 = arith.mulf %6, %6 : vector<2x512xf32>
    %cst_2 = arith.constant dense<0.000000e+00> : vector<512xf32>
    %8 = vector.multi_reduction <add>, %7, %cst_2 [0] : vector<2x512xf32> to vector<512xf32>
    %9 = vector.shape_cast %8 : vector<512xf32> to vector<1x512xf32>
    %cst_3 = arith.constant 1.000000e+00 : f32
    %10 = vector.broadcast %cst_3 : f32 to vector<1x512xf32>
    %11 = arith.mulf %9, %10 : vector<1x512xf32>
    %12 = math.sqrt %11 : vector<1x512xf32>
    %cst_4 = arith.constant 9.99999997E-7 : f32
    %13 = vector.broadcast %cst_4 : f32 to vector<1x512xf32>
    %14 = arith.addf %12, %13 : vector<1x512xf32>
    %15 = tpu.reciprocal %14 : vector<1x512xf32> -> vector<1x512xf32>
    %16 = vector.broadcast %15 : vector<1x512xf32> to vector<2x512xf32>
    %17 = arith.mulf %6, %16 : vector<2x512xf32>
    %c0_5 = arith.constant 0 : index
    %c0_6 = arith.constant 0 : index
    %18 = vector.load %arg2[%c0_5, %c0_6] : memref<2x512xf32, #tpu.memory_space<vmem>>, vector<2x512xf32>
    tpu.vector_store %arg2[%c0_5, %c0_6], %17 {strides = array<i32>} : memref<2x512xf32, #tpu.memory_space<vmem>>, vector<2x512xf32>,
    return
  }
  func.func @transform_0(%arg0: i32) -> (i32, i32) {
    %c0_i32 = arith.constant 0 : i32
    %c0_i32_0 = arith.constant 0 : i32
    return %c0_i32, %arg0 : i32, i32
  }
  func.func @transform_1(%arg0: i32) -> (i32, i32) {
    %c0_i32 = arith.constant 0 : i32
    %c0_i32_0 = arith.constant 0 : i32
    return %c0_i32, %arg0 : i32, i32
  }
}

</mosaic_0001>

<bundles_post_ra>
// kernel: tpu_custom_call.1
= control target key start
LH: loop header
LB: loop body
LE: loop exit
PB: predicated region body
PF: predicated region fallthrough
CT: control target
= control target key end

     0   :  { %6 = vsyncpa [#allocation3], 0  ;;  %s807_s0 = inlined_call_operand.hbm [shape: f32[2,1024], index: 0, kind: input, shape index: {}]   ;;  %s808_s1 = inlined_call_operand.hbm [shape: f32[2,1024], index: 1, kind: output, shape index: {}]  }
   0x1   :  { %8 = vsyncpa [#allocation3 + $0x1], 0 }
   0x2   :  { %9 = vsyncpa [#allocation4], 0 }
   0x3   :  { %11 = vsyncpa [#allocation4 + $0x1], 0  ;;  %s639_s6 = smov 0   ;;  %s641_s7 = smov 0  }
   0x4   :  { %s643_s8 = smov 0   ;;  %s645_s9 = smov 0  }
   0x5 LB: > { %s660_s10 = sadd.s32 4294967295, %s626_s9   ;;  %s449_s11 = sadd.s32 4294967294, %s626_s9   ;;  %s626_s9 = sphi %s645_s9, %s820_s9   ;;  %s622_s8 = sphi %s643_s8, %s819_s8   ;;  %s618_s7 = sphi %s641_s7, %s818_s7   ;;  %s614_s6 = sphi %s639_s6, %s817_s6  }
   0x6   : > { %s664_s12 = sadd.s32 1, %s626_s9   ;;  %s24_s13 = sadd.s32 1, %s622_s8 }
   0x7   : > { %s21_s14 = ssub.s32 %s626_s9, %s664_s12  ;;  %p31_p0 = scmp.ne.s32.totalorder %s622_s8, %s618_s7 }
   0x8   : > { %p22_p1 = scmp.eq.s32.totalorder %s21_s14, 0  ;;  %p32_p2 = scmp.eq.s32.totalorder %s626_s9, 0 }
   0x9   : > { %p37_p3 = scmp.ne.s32.totalorder %s618_s7, %s614_s6  ;;  %p38_p4 = scmp.eq.s32.totalorder %s660_s10, 0 }
   0xa   : > { %s676_s15 = scalar_select %p22_p1, %s622_s8, %s24_s13  }
   0xb   : > { %p678_p5 = por %p32_p2, %p31_p0  ;;  %p682_p6 = por %p38_p4, %p37_p3 }
   0xc   : > { %p61_p7 = scmp.eq.s32.totalorder %s660_s10, 1  ;;  %p67_p8 = scmp.eq.s32.totalorder %s449_s11, 1 }
   0xd   : > { %p477_p10 = scmp.lt.s32.totalorder %s626_s9, 2  ;;  %s87_s20 = sand.u32 1, %s622_s8  }
   0xe   : > { %p689_p11 = por %p61_p7, %p31_p0  ;;  %p693_p12 = por %p67_p8, %p37_p3 }
   0xf   : > { %s463_s21 = sshll.u32 %s626_s9, 3  ;;  %s452_s22 = sshll.u32 %s87_s20, 3 }
  0x10   : > { %s96_s25 = scalar_lea.hbm %s807_s0, %s463_s21  ;;  %s91_s27 = scalar_lea.vmem [#allocation2], %s452_s22 }
  0x11   : > { %s98_s26 = sshll.u32 %s96_s25, 4  ;;  %s100_s28 = sshll.u32 %s91_s27, 4  ;;  %s99_s26 = int_to_ptr.hbm [resolvable:$true] %s98_s26  ;;  %s101_s28 = int_to_ptr.vmem [resolvable:$true] %s100_s28 }
  0x12   : > { %p704_p13 = pnand %p477_p10, %p678_p5  ;;  %p455_p0 = scmp.ge.s32.totalorder %s626_s9, 1 }
  0x13   : > { %p105_p1 = scmp.lt.s32.totalorder %s626_s9, 3  ;;  %s88_s30 = scalar_lea.sflag [#allocation3], %s87_s20 }
  0x14   : > { %s530_s2 = sshra.s32 %s99_s26, 4  ;;  %p534_p3 = pneg %p704_p13  ;;  %s531_s2 = int_to_ptr.hbm [resolvable:$true] %s530_s2 }
  0x15   : > { %s532_s3 = scalar_lea.hbm %s531_s2, 8  ;;  %s537_s11 = scalar_lea.hbm %s807_s0, 16 }
  0x16   : > { %p533_p2 = scmp.ne.s32.totalorder %s531_s2, %s532_s3  ;;  %p538_p5 = scmp.lt.s32.totalorder %s531_s2, %s807_s0 }
  0x17   : > { %p539_p8 = scmp.lt.s32.totalorder %s537_s11, %s532_s3 }
  0x18   : > { %p535_p4 = pnand %p534_p3, %p533_p2 }
  0x19   : > { %p540_p10 = por %p539_p8, %p538_p5 }
  0x1a   : > { %p536_p7 = pneg %p535_p4 }
  0x1c   : > { %p541_p9 = pnand %p540_p10, %p536_p7 }
  0x1e   : > { %544 = shalt.err (!%p541_p9)
}
  0x1f   : > { %472 = dma.hbm_to_vmem [thread:$0]  (!%p704_p13), %s99_s26, 128, %s101_s28, %s88_s30  }
  0x20   : > { %p106_p2 = pnand %p455_p0, %p105_p1 }
  0x21   : > { %s725_s16 = sand.u32 (!%p106_p2), 1, %s618_s7  }
  0x22   : > { %109 = sbr.rel (%p106_p2) target bundleno = 148 (0x94), region = 24  ;;  %s456_s20 = sshll.u32 (!%p106_p2), %s725_s16, 3 }
  0x23   : > { %s112_s21 = scalar_lea.sflag (!%p106_p2), [#allocation3], %s725_s16  ;;  %s115_s22 = scalar_lea.vmem (!%p106_p2), [#allocation2], %s456_s20 }
  0x27   : > { %605 = dma.done.wait (%p682_p6), %s112_s21, 128  }
  0x28   : > { %607 = vsyncadd (%p682_p6), %s112_s21, 4294967168  ;;  %v628_v0 = vmov 2.0   ;;  %v137_v2 = vld [vmem:[%s115_s22] sm:$0xff]  ;;  %vm148_vm0 = vcmask 1041408   ;;  %vm196_vm2 = vcmask 1045508   ;;  %vm198_vm3 = vcmask 1043456  }
  0x29   : > { %512 = vrcp.f32 %v628_v0  ;;  %139 = vst [vmem:[#allocation1] ss:$4 sm:$0xff] %v137_v2  ;;  %s464_s17 = sshll.u32 %s660_s10, 3  ;;  %s134_s25 = scalar_lea.vmem [#allocation5], %s456_s20 }
  0x2a   : > { %s374_s10 = scalar_lea.hbm %s808_s1, %s464_s17  ;;  %s376_s26 = sshll.u32 %s134_s25, 4  ;;  %s377_s26 = int_to_ptr.vmem [resolvable:$true] %s376_s26 }
  0x2b   : > { %s378_s27 = sshll.u32 %s374_s10, 4  ;;  %s363_s28 = scalar_lea.sflag [#allocation4], %s725_s16  ;;  %s379_s27 = int_to_ptr.hbm [resolvable:$true] %s378_s27 }
  0x2c   : > { %s574_s29 = sshra.s32 %s379_s27, 4  ;;  %s580_s4 = scalar_lea.hbm %s808_s1, 16  ;;  %s575_s29 = int_to_ptr.hbm [resolvable:$true] %s574_s29 }
  0x2d   : > { %s576_s30 = scalar_lea.hbm %s575_s29, 8  ;;  %p581_p0 = scmp.lt.s32.totalorder %s575_s29, %s808_s1 }
  0x2e   : > { %p577_p6 = scmp.ne.s32.totalorder %s575_s29, %s576_s30  ;;  %p582_p1 = scmp.lt.s32.totalorder %s580_s4, %s576_s30 }
  0x2f   : > { %v513_v1 = vpop.eup %512 }
  0x30   : > { %v178_v3 = vmul.f32 2.0, %v513_v1  ;;  %v140_v5 = vld.sshfl [vmem:[#allocation1] sm:$0xff pattern:$0x73625140]  ;;  %vm182_vm1 = vweird.f32 %v513_v1  ;;  %p578_p9 = pnand %p577_p6, %p689_p11  ;;  %p583_p3 = por %p582_p1, %p581_p0 }
  0x31   : > { %v141_v6 = vld.sshfl [vmem:[#allocation1 + $0x8] sm:$0xff pattern:$0x73625140]  ;;  %v142_v7 = vld.sshfl [vmem:[#allocation1 + $0x10] sm:$0xff pattern:$0x73625140] }
  0x32   : > { %v179_v4 = vsub.f32 1.0, %v178_v3  ;;  %v143_v8 = vld.sshfl [vmem:[#allocation1 + $0x18] sm:$0xff pattern:$0x73625140]  ;;  %v149_v9 = vsel %vm148_vm0, %v140_v5, 0.0  ;;  %v156_v10 = vsel %vm148_vm0, %v141_v6, 0.0  ;;  %p579_p13 = pneg %p578_p9 }
  0x33   : > { %v163_v11 = vsel %vm148_vm0, %v142_v7, 0.0  ;;  %v170_v12 = vsel %vm148_vm0, %v143_v8, 0.0  ;;  %v150_v13 = vrot.slane %v149_v9, 4  ;;  %v157_v14 = vrot.slane %v156_v10, 4 }
  0x34   : > { %v164_v15 = vrot.slane %v163_v11, 4  ;;  %v171_v16 = vrot.slane %v170_v12, 4  ;;  %v180_v17 = vmul.f32 %v513_v1, %v179_v4  ;;  %p584_p4 = pnand %p583_p3, %p579_p13 }
  0x35   : > { %v151_v18 = vadd.f32 %v150_v13, %v149_v9  ;;  %v158_v19 = vadd.f32 %v157_v14, %v156_v10 }
  0x36   : > { %v165_v20 = vadd.f32 %v164_v15, %v163_v11  ;;  %v172_v21 = vadd.f32 %v171_v16, %v170_v12  ;;  %v181_v26 = vadd.f32 %v513_v1, %v180_v17 }
  0x37   : > { %v152_v22 = vrot.slane %v151_v18, 2  ;;  %v159_v23 = vrot.slane %v158_v19, 2 }
  0x38   : > { %v166_v24 = vrot.slane %v165_v20, 2  ;;  %v173_v25 = vrot.slane %v172_v21, 2  ;;  %v183_v35 = vsel %vm182_vm1, %v513_v1, %v181_v26 }
  0x39   : > { %v153_v27 = vadd.f32 %v152_v22, %v151_v18  ;;  %v160_v28 = vadd.f32 %v159_v23, %v158_v19 }
  0x3a   : > { %v167_v29 = vadd.f32 %v166_v24, %v165_v20  ;;  %v174_v30 = vadd.f32 %v173_v25, %v172_v21 }
  0x3b   : > { %v154_v31 = vrot.slane %v153_v27, 1  ;;  %v161_v32 = vrot.slane %v160_v28, 1 }
  0x3c   : > { %v168_v33 = vrot.slane %v167_v29, 1  ;;  %v175_v34 = vrot.slane %v174_v30, 1 }
  0x3d   : > { %v155_v36 = vadd.f32 %v154_v31, %v153_v27  ;;  %v162_v37 = vadd.f32 %v161_v32, %v160_v28 }
  0x3e   : > { %v169_v38 = vadd.f32 %v168_v33, %v167_v29  ;;  %v176_v39 = vadd.f32 %v175_v34, %v174_v30 }
  0x3f   : > { %v185_v40 = vmul.f32 %v183_v35, %v162_v37  ;;  %v184_v43 = vmul.f32 %v183_v35, %v155_v36 }
  0x40   : > { %v186_v41 = vmul.f32 %v183_v35, %v169_v38  ;;  %v187_v42 = vmul.f32 %v183_v35, %v176_v39 }
  0x41   : > { %v192_v44 = vrot.slane %v185_v40, 6 }
  0x42   : > { %v193_v45 = vrot.slane %v186_v41, 4  ;;  %v194_v46 = vrot.slane %v187_v42, 2 }
  0x43   : > { %v195_v47 = vsel %vm148_vm0, %v184_v43, %v192_v44 }
  0x44   : > { %v197_v48 = vsel %vm196_vm2, %v193_v45, %v194_v46 }
  0x45   : > { %v199_v49 = vsel %vm198_vm3, %v195_v47, %v197_v48 }
  0x46   : > { %v742_v50 = vsub.f32 %v137_v2, %v199_v49 }
  0x48   : > { %v202_v51 = vmul.f32 %v742_v50, %v742_v50 }
  0x4a   : > { %204 = vst [vmem:[#allocation1] ss:$4 sm:$0xff] %v202_v51 }
  0x51   : > { %v205_v52 = vld.sshfl [vmem:[#allocation1] sm:$0xff pattern:$0x73625140]  ;;  %v206_v53 = vld.sshfl [vmem:[#allocation1 + $0x8] sm:$0xff pattern:$0x73625140] }
  0x52   : > { %v207_v54 = vld.sshfl [vmem:[#allocation1 + $0x10] sm:$0xff pattern:$0x73625140]  ;;  %v208_v55 = vld.sshfl [vmem:[#allocation1 + $0x18] sm:$0xff pattern:$0x73625140] }
  0x53   : > { %v213_v56 = vsel %vm148_vm0, %v205_v52, 0.0  ;;  %v220_v57 = vsel %vm148_vm0, %v206_v53, 0.0  ;;  %v227_v58 = vsel %vm148_vm0, %v207_v54, 0.0  ;;  %v234_v59 = vsel %vm148_vm0, %v208_v55, 0.0 }
  0x54   : > { %v214_v60 = vrot.slane %v213_v56, 4  ;;  %v221_v61 = vrot.slane %v220_v57, 4  ;;  %v228_v62 = vrot.slane %v227_v58, 4  ;;  %v235_v63 = vrot.slane %v234_v59, 4 }
  0x56   : > { %v215_v0 = vadd.f32 %v214_v60, %v213_v56  ;;  %v222_v1 = vadd.f32 %v221_v61, %v220_v57  ;;  %v229_v2 = vadd.f32 %v228_v62, %v227_v58  ;;  %v236_v3 = vadd.f32 %v235_v63, %v234_v59 }
  0x58   : > { %v216_v4 = vrot.slane %v215_v0, 2  ;;  %v223_v5 = vrot.slane %v222_v1, 2  ;;  %v230_v6 = vrot.slane %v229_v2, 2  ;;  %v237_v7 = vrot.slane %v236_v3, 2 }
  0x5a   : > { %v217_v8 = vadd.f32 %v216_v4, %v215_v0  ;;  %v224_v9 = vadd.f32 %v223_v5, %v222_v1  ;;  %v231_v10 = vadd.f32 %v230_v6, %v229_v2  ;;  %v238_v11 = vadd.f32 %v237_v7, %v236_v3 }
  0x5c   : > { %v218_v12 = vrot.slane %v217_v8, 1  ;;  %v225_v13 = vrot.slane %v224_v9, 1  ;;  %v232_v14 = vrot.slane %v231_v10, 1  ;;  %v239_v15 = vrot.slane %v238_v11, 1 }
  0x5e   : > { %v219_v16 = vadd.f32 %v218_v12, %v217_v8  ;;  %v226_v17 = vadd.f32 %v225_v13, %v224_v9  ;;  %v233_v18 = vadd.f32 %v232_v14, %v231_v10  ;;  %v240_v19 = vadd.f32 %v239_v15, %v238_v11 }
  0x60   : > { %514 = vrsqrt.f32 %v219_v16  ;;  %vm248_vm4 = vcmp.eq.f32.partialorder %v219_v16, inf  ;;  %vm250_vm5 = vcmp.eq.f32.partialorder %v219_v16, 0.0  ;;  %v251_v40 = vand.u32 2147483648, %v219_v16 }
  0x61   : > { %516 = vrsqrt.f32 %v226_v17  ;;  %vm260_vm6 = vcmp.eq.f32.partialorder %v226_v17, inf  ;;  %vm262_vm7 = vcmp.eq.f32.partialorder %v226_v17, 0.0  ;;  %v263_v46 = vand.u32 2147483648, %v226_v17 }
  0x62   : > { %518 = vrsqrt.f32 %v233_v18  ;;  %vm272_vm8 = vcmp.eq.f32.partialorder %v233_v18, inf  ;;  %vm274_vm9 = vcmp.eq.f32.partialorder %v233_v18, 0.0  ;;  %v275_v51 = vand.u32 2147483648, %v233_v18 }
  0x63   : > { %520 = vrsqrt.f32 %v240_v19  ;;  %vm284_vm10 = vcmp.eq.f32.partialorder %v240_v19, inf  ;;  %v287_v57 = vand.u32 2147483648, %v240_v19  ;;  %vm286_vm11 = vcmp.eq.f32.partialorder %v240_v19, 0.0 }
  0x66   : > { %v515_v20 = vpop.eup %514 }
  0x67   : > { %v517_v21 = vpop.eup %516  ;;  %v242_v22 = vmul.f32 %v515_v20, %v219_v16 }
  0x68   : > { %v519_v23 = vpop.eup %518  ;;  %v254_v24 = vmul.f32 %v517_v21, %v226_v17 }
  0x69   : > { %v521_v25 = vpop.eup %520  ;;  %v243_v26 = vmul.f32 %v515_v20, %v242_v22  ;;  %v266_v27 = vmul.f32 %v519_v23, %v233_v18 }
  0x6a   : > { %v255_v28 = vmul.f32 %v517_v21, %v254_v24  ;;  %v278_v29 = vmul.f32 %v521_v25, %v240_v19 }
  0x6b   : > { %v244_v30 = vmul.f32 0.5, %v243_v26  ;;  %v267_v31 = vmul.f32 %v519_v23, %v266_v27 }
  0x6c   : > { %v256_v32 = vmul.f32 0.5, %v255_v28  ;;  %v279_v33 = vmul.f32 %v521_v25, %v278_v29 }
  0x6d   : > { %v245_v34 = vsub.f32 1.5, %v244_v30  ;;  %v268_v35 = vmul.f32 0.5, %v267_v31 }
  0x6e   : > { %v257_v36 = vsub.f32 1.5, %v256_v32  ;;  %v280_v37 = vmul.f32 0.5, %v279_v33 }
  0x6f   : > { %v246_v38 = vmul.f32 %v515_v20, %v245_v34  ;;  %v269_v39 = vsub.f32 1.5, %v268_v35 }
  0x70   : > { %v258_v41 = vmul.f32 %v517_v21, %v257_v36  ;;  %v281_v42 = vsub.f32 1.5, %v280_v37 }
  0x71   : > { %v247_v43 = vmul.f32 %v246_v38, %v219_v16  ;;  %v270_v44 = vmul.f32 %v519_v23, %v269_v39 }
  0x72   : > { %v259_v45 = vmul.f32 %v258_v41, %v226_v17  ;;  %v282_v47 = vmul.f32 %v521_v25, %v281_v42 }
  0x73   : > { %v249_v48 = vsel %vm248_vm4, %v219_v16, %v247_v43  ;;  %v271_v49 = vmul.f32 %v270_v44, %v233_v18 }
  0x74   : > { %v252_v52 = vsel %vm250_vm5, %v251_v40, %v249_v48  ;;  %v261_v53 = vsel %vm260_vm6, %v226_v17, %v259_v45  ;;  %v283_v54 = vmul.f32 %v282_v47, %v240_v19 }
  0x75   : > { %v264_v55 = vsel %vm262_vm7, %v263_v46, %v261_v53  ;;  %v273_v56 = vsel %vm272_vm8, %v233_v18, %v271_v49  ;;  %v751_v58 = vadd.f32 1e-06, %v252_v52 }
  0x76   : > { %v276_v59 = vsel %vm274_vm9, %v275_v51, %v273_v56  ;;  %v285_v60 = vsel %vm284_vm10, %v240_v19, %v283_v54  ;;  %v290_v61 = vadd.f32 1e-06, %v264_v55 }
  0x77   : > { %v288_v62 = vsel %vm286_vm11, %v287_v57, %v285_v60  ;;  %v291_v63 = vadd.f32 1e-06, %v276_v59  ;;  %522 = vrcp.f32 %v751_v58  ;;  %vm298_vm12 = vweird.f32 %v751_v58 }
  0x78   : > { %v292_v0 = vadd.f32 1e-06, %v288_v62  ;;  %524 = vrcp.f32 %v290_v61  ;;  %v302_v5 = vand.u32 2147483647, %v751_v58  ;;  %v304_v8 = vand.u32 2147483648, %v751_v58 }
  0x79   : > { %526 = vrcp.f32 %v291_v63  ;;  %vm312_vm13 = vweird.f32 %v290_v61  ;;  %v316_v12 = vand.u32 2147483647, %v290_v61  ;;  %v318_v13 = vand.u32 2147483648, %v290_v61 }
  0x7a   : > { %528 = vrcp.f32 %v292_v0  ;;  %vm326_vm14 = vweird.f32 %v291_v63  ;;  %v330_v18 = vand.u32 2147483647, %v291_v63  ;;  %v332_v19 = vand.u32 2147483648, %v291_v63 }
  0x7b   : > { %vm317_vm6 = vcmp.eq.f32.partialorder %v316_v12, 8.507059e+37  ;;  %v319_v25 = vor.u32 1.1754944e-38, %v318_v13  ;;  %v346_v26 = vand.u32 2147483648, %v292_v0  ;;  %v344_v29 = vand.u32 2147483647, %v292_v0 }
  0x7c   : > { %vm331_vm10 = vcmp.eq.f32.partialorder %v330_v18, 8.507059e+37  ;;  %v333_v31 = vor.u32 1.1754944e-38, %v332_v19  ;;  %vm340_vm11 = vweird.f32 %v292_v0  ;;  %v305_v36 = vor.u32 1.1754944e-38, %v304_v8 }
  0x7d   : > { %v523_v1 = vpop.eup %522  ;;  %v347_v38 = vor.u32 1.1754944e-38, %v346_v26 }
  0x7e   : > { %v525_v2 = vpop.eup %524  ;;  %v294_v3 = vmul.f32 %v523_v1, %v751_v58  ;;  %vm299_vm15 = vweird.f32 %v523_v1 }
  0x7f   : > { %v527_v4 = vpop.eup %526  ;;  %v308_v6 = vmul.f32 %v525_v2, %v290_v61  ;;  %vm313_vm1 = vweird.f32 %v525_v2  ;;  %vm760_vm5 = vmor %vm298_vm12, %vm299_vm15  ;;  %vm345_vm15 = vcmp.eq.f32.partialorder %v344_v29, 8.507059e+37 }
  0x80   : > { %v295_v7 = vsub.f32 1.0, %v294_v3  ;;  %v322_v9 = vmul.f32 %v527_v4, %v291_v63  ;;  %v529_v10 = vpop.eup %528  ;;  %vm327_vm4 = vweird.f32 %v527_v4  ;;  %vm314_vm7 = vmor %vm312_vm13, %vm313_vm1  ;;  %vm303_vm13 = vcmp.eq.f32.partialorder %v302_v5, 8.507059e+37 }
  0x81   : > { %v309_v11 = vsub.f32 1.0, %v308_v6  ;;  %v336_v16 = vmul.f32 %v529_v10, %v292_v0  ;;  %vm341_vm8 = vweird.f32 %v529_v10  ;;  %vm328_vm9 = vmor %vm326_vm14, %vm327_vm4 }
  0x82   : > { %v296_v14 = vmul.f32 %v523_v1, %v295_v7  ;;  %v323_v15 = vsub.f32 1.0, %v322_v9  ;;  %vm342_vm12 = vmor %vm340_vm11, %vm341_vm8 }
  0x83   : > { %v310_v17 = vmul.f32 %v525_v2, %v309_v11  ;;  %v337_v22 = vsub.f32 1.0, %v336_v16 }
  0x84   : > { %v297_v20 = vadd.f32 %v523_v1, %v296_v14  ;;  %v324_v21 = vmul.f32 %v527_v4, %v323_v15 }
  0x85   : > { %v311_v24 = vadd.f32 %v525_v2, %v310_v17  ;;  %v338_v28 = vmul.f32 %v529_v10, %v337_v22 }
  0x86   : > { %v325_v27 = vadd.f32 %v527_v4, %v324_v21  ;;  %v301_v32 = vsel %vm760_vm5, %v523_v1, %v297_v20 }
  0x87   : > { %v315_v30 = vsel %vm314_vm7, %v525_v2, %v311_v24  ;;  %v339_v35 = vadd.f32 %v529_v10, %v338_v28  ;;  %v306_v42 = vsel %vm303_vm13, %v305_v36, %v301_v32 }
  0x88   : > { %v320_v33 = vsel %vm317_vm6, %v319_v25, %v315_v30  ;;  %v329_v34 = vsel %vm328_vm9, %v527_v4, %v325_v27 }
  0x89   : > { %v334_v37 = vsel %vm331_vm10, %v333_v31, %v329_v34  ;;  %v353_v39 = vrot.slane %v320_v33, 6  ;;  %v343_v40 = vsel %vm342_vm12, %v529_v10, %v339_v35 }
  0x8a   : > { %v354_v41 = vrot.slane %v334_v37, 4  ;;  %v348_v43 = vsel %vm345_vm15, %v347_v38, %v343_v40 }
  0x8b   : > { %v355_v44 = vrot.slane %v348_v43, 2  ;;  %v356_v45 = vsel %vm148_vm0, %v306_v42, %v353_v39 }
  0x8d   : > { %v357_v46 = vsel %vm196_vm2, %v354_v41, %v355_v44 }
  0x8e   : > { %v358_v47 = vsel %vm198_vm3, %v356_v45, %v357_v46 }
  0x8f   : > { %v360_v48 = vmul.f32 %v358_v47, %v742_v50 }
  0x91   : > { %361 = vst [vmem:[%s134_s25] sm:$0xff] %v360_v48 }
  0x92   : > { %587 = shalt.err (!%p584_p4)
}
  0x93   : > { %467 = dma.vmem_to_hbm [thread:$0]  (%p689_p11), %s377_s26, 128, %s379_s27, %s363_s28  }
  0x94 PF: > { %s390_s13 = sand.u32 1, %s614_s6   ;;  %p816_p7 = scmp.ge.s32.totalorder %s626_s9, 2 }
  0x95   : > { %s391_s14 = scalar_lea.sflag [#allocation4], %s390_s13 }
  0x96   : > { %p474_p5 = pnand %p816_p7, %p693_p12 }
  0x98   : > { %p475_p8 = pneg %p474_p5 }
  0x9a   : > { %609 = dma.done.wait (%p475_p8), %s391_s14, 128  }
  0x9b   : > { %611 = vsyncadd (%p475_p8), %s391_s14, 4294967168  ;;  %p14_p10 = scmp.ge.s32.totalorder %s664_s12, 4   ;;  %s817_s6 = smov %s618_s7 }
  0x9c   : > { %s818_s7 = smov %s622_s8  ;;  %s819_s8 = smov %s676_s15 }
  0x9d   : > { %s820_s9 = smov %s664_s12  ;;  %16 = sbr.rel (!%p14_p10) target bundleno = 5 (0x5), region = 69 }
  0xa2   :  { %397 = vsyncpa [#allocation3], 1 }
  0xa3   :  { %399 = vsyncpa [#allocation3 + $0x1], 1 }
  0xa4   :  { %400 = vsyncpa [#allocation4], 1 }
  0xa5   :  { %402 = vsyncpa [#allocation4 + $0x1], 1 }

</bundles_post_ra>
